<compile_context>
chip_gen: v6e
topology: v6e:2x2x1
jax: 0.10.0
libtpu: 0.0.40
codegen_flags: <defaults>
</compile_context>

<pallas_src>
import functools

import jax
import jax.numpy as jnp
from jax import lax
from jax.experimental import pallas as pl
from jax.experimental.pallas import tpu as pltpu


def _resblock_kernel(mask_ref, x_ref, w1_ref, b1_ref, w2_ref, b2_ref, o_ref,
                     *, W, n_img):
    """Fused conv3x3 -> ReLU -> conv3x3 -> +identity on one block of images.

    mask_ref : (9, H*W)  f32   precomputed zero-padding halo masks (per tap)
    x_ref    : (nb, C, H*W)    input block (whole images, NCHW memory order)
    w*_ref   : (9, C, C)       per-tap (c_out, c_in) weights
    b*_ref   : (C, 1)
    o_ref    : (nb, C, H*W)
    """
    C = x_ref.shape[1]
    HW = mask_ref.shape[1]

    masks = mask_ref[...]          # (9, HW): tiny, shared by both convs
    b1 = b1_ref[...]               # (C, 1)
    b2 = b2_ref[...]

    # Static per-tap lane offsets for 'same' 3x3 conv: q -> q + dy*W + dx.
    taps = tuple((t, ((t // 3) - 1) * W + ((t % 3) - 1)) for t in range(9))

    def conv3x3(inp, w_ref):
        # out[o, q] = sum_{t,i} w[t, o, i] * inp[i, q + off_t]   (zero padded)
        acc = jnp.zeros((C, HW), jnp.float32)
        for t, off in taps:
            if off == 0:
                shifted = inp                      # center tap: no shift, always valid
            else:
                # Single XLU rotation (static shift); wrapped lanes are zeroed
                # by the precomputed halo mask.
                shifted = pltpu.roll(inp, shift=(-off) % HW, axis=1)
                shifted = shifted * masks[t:t + 1, :]
            # (C_out, C_in) @ (C_in, HW) on the MXU, f32 accumulation.
            acc = acc + jnp.dot(w_ref[t], shifted,
                                preferred_element_type=jnp.float32)
        return acc

    def per_image(i, carry):
        x0 = x_ref[i]                                          # (C, HW)
        hidden = jnp.maximum(conv3x3(x0, w1_ref) + b1, 0.0)    # stays in vregs
        y = conv3x3(hidden, w2_ref) + b2 + x0                  # residual add
        o_ref[i] = y.astype(o_ref.dtype)                       # lane-dense store
        return carry

    # fori_loop (not a Python loop) so temporaries are O(one image), not O(block).
    lax.fori_loop(0, n_img, per_image, 0)


def _make_tap_masks(H, W, dtype=jnp.float32):
    """(9, H*W) validity masks for the 9 taps of a zero-padded 3x3 conv."""
    p = jnp.arange(H * W, dtype=jnp.int32)
    h = p // W
    w = p % W
    rows = []
    for ky in range(3):
        for kx in range(3):
            dy, dx = ky - 1, kx - 1
            hh = h + dy
            ww = w + dx
            valid = (hh >= 0) & (hh < H) & (ww >= 0) & (ww < W)
            rows.append(valid.astype(dtype))
    return jnp.stack(rows, axis=0)


def _vmem_capacity_bytes():
    try:
        info = pltpu.get_tpu_info()
        cap = getattr(info, "vmem_capacity_bytes", None)
        if cap:
            return int(cap)
    except Exception:
        pass
    return 64 << 20          # conservative fallback (v7x per-core physical)


def _pick_images_per_step(n, hw, c, budget_bytes):
    """Largest divisor nb of n whose real per-step VMEM footprint fits the
    budget, preferring >= 2 grid steps when the batch allows it (2 TCs on v7x
    + input/output pipelining)."""
    per_img = hw * c * 4     # one f32 image block

    def fits(nb):
        # 2x input + 2x output double buffers + per-image temporaries
        # (x0, hidden, acc, rolled operand, masks) -- rough upper bound.
        return (4 * nb + 8) * per_img <= budget_bytes

    for require_multi_step in ((n >= 2), False):
        for nb in range(n, 0, -1):
            if n % nb:
                continue
            if require_multi_step and n // nb < 2:
                continue
            if fits(nb):
                return nb
    return 1


def resblock_pallas(x, w1, b1, w2, b2, *, images_per_step=None):
    """Fused ResBlock forward.

    x  : (N, C, H, W) float32   (NCHW, matching the PyTorch module)
    w* : (C, C, 3, 3)           PyTorch Conv2d weight layout (OIHW)
    b* : (C,)
    """
    N, C, H, W = x.shape
    HW = H * W

    cap = _vmem_capacity_bytes()
    vmem_limit = int(min(cap // 2, 32 << 20))     # explicit scoped-VMEM limit
    pick_budget = int(min(cap // 8, 12 << 20))    # per-step footprint budget

    nb = (images_per_step if images_per_step is not None
          else _pick_images_per_step(N, HW, C, pick_budget))
    assert N % nb == 0
    grid = (N // nb,)

    # Free, contiguous reshapes only (no N<->C transpose HBM round trips).
    x_r = x.reshape(N, C, HW)
    w1_k = jnp.transpose(w1, (2, 3, 0, 1)).reshape(9, C, C)   # (tap, c_out, c_in)
    w2_k = jnp.transpose(w2, (2, 3, 0, 1)).reshape(9, C, C)
    b1_k = b1.reshape(C, 1)
    b2_k = b2.reshape(C, 1)
    masks = _make_tap_masks(H, W)

    kernel = functools.partial(_resblock_kernel, W=W, n_img=nb)
    out = pl.pallas_call(
        kernel,
        out_shape=jax.ShapeDtypeStruct((N, C, HW), x.dtype),
        grid_spec=pltpu.PrefetchScalarGridSpec(
            num_scalar_prefetch=0,
            grid=grid,
            in_specs=[
                pl.BlockSpec((9, HW), lambda g: (0, 0)),          # halo masks (constant)
                pl.BlockSpec((nb, C, HW), lambda g: (g, 0, 0)),   # x block (whole images)
                pl.BlockSpec((9, C, C), lambda g: (0, 0, 0)),     # w1
                pl.BlockSpec((C, 1), lambda g: (0, 0)),           # b1
                pl.BlockSpec((9, C, C), lambda g: (0, 0, 0)),     # w2
                pl.BlockSpec((C, 1), lambda g: (0, 0)),           # b2
            ],
            out_specs=pl.BlockSpec((nb, C, HW), lambda g: (g, 0, 0)),
        ),
        compiler_params=pltpu.CompilerParams(
            dimension_semantics=("parallel",),
            vmem_limit_bytes=vmem_limit,
        ),
    )(masks, x_r, w1_k, b1_k, w2_k, b2_k)

    return out.reshape(N, C, H, W)


def _reference(x, w1, b1, w2, b2):
    """Pure-JAX reference with the same semantics as the PyTorch ResBlock (NCHW)."""
    dn = lax.conv_dimension_numbers(x.shape, w1.shape, ('NCHW', 'OIHW', 'NCHW'))

    def conv(a, w):
        return lax.conv_general_dilated(a, w, (1, 1), 'SAME',
                                        dimension_numbers=dn,
                                        precision=lax.Precision.HIGHEST)

    C = x.shape[1]
    h = jnp.maximum(conv(x, w1) + b1.reshape(1, C, 1, 1), 0.0)
    y = conv(h, w2) + b2.reshape(1, C, 1, 1)
    return y + x


if __name__ == "__main__":
    key = jax.random.PRNGKey(0)
    N, C, H, W = 2, 4, 16, 16       # inout = 4 channels, ks = 3
    ks = 3

    k_x, k_w1, k_b1, k_w2, k_b2 = jax.random.split(key, 5)
    x = jax.random.normal(k_x, (N, C, H, W), dtype=jnp.float32)
    # Deterministic synthetic parameters (roughly Conv2d-default-like scale).
    fan_in = C * ks * ks
    bound = 1.0 / (fan_in ** 0.5)
    w1 = jax.random.uniform(k_w1, (C, C, ks, ks), jnp.float32, -bound, bound)
    b1 = jax.random.uniform(k_b1, (C,), jnp.float32, -bound, bound)
    w2 = jax.random.uniform(k_w2, (C, C, ks, ks), jnp.float32, -bound, bound)
    b2 = jax.random.uniform(k_b2, (C,), jnp.float32, -bound, bound)

    out = resblock_pallas(x, w1, b1, w2, b2)
    out = jax.block_until_ready(out)

    ref = _reference(x, w1, b1, w2, b2)
    assert out.shape == (N, C, H, W)
    assert jnp.allclose(out, ref, atol=1e-4, rtol=1e-4), "mismatch vs JAX reference"
    print("KERNEL_OK")
</pallas_src>

<mosaic_0001>
module attributes {stable_mosaic.version = 11 : i64} {
  func.func @_resblock_kernel(%arg0: i32, %arg1: memref<9x256xf32, #tpu.memory_space<vmem>>, %arg2: memref<1x4x256xf32, #tpu.memory_space<vmem>>, %arg3: memref<9x4x4xf32, #tpu.memory_space<vmem>>, %arg4: memref<4x1xf32, #tpu.memory_space<vmem>>, %arg5: memref<9x4x4xf32, #tpu.memory_space<vmem>>, %arg6: memref<4x1xf32, #tpu.memory_space<vmem>>, %arg7: memref<1x4x256xf32, #tpu.memory_space<vmem>>) attributes {dimension_semantics = [#tpu.dimension_semantics<parallel>], iteration_bounds = array<i64: 2>, scalar_prefetch = 0 : i64, scratch_operands = 0 : i64, tpu.core_type = #tpu.core_type<tc>, window_params = [{pipeline_mode = #tpu.pipeline_mode<synchronous>, transform_indices = @transform_0, window_bounds = array<i64: 9, 256>}, {transform_indices = @transform_1, window_bounds = array<i64: 1, 4, 256>}, {pipeline_mode = #tpu.pipeline_mode<synchronous>, transform_indices = @transform_2, window_bounds = array<i64: 9, 4, 4>}, {pipeline_mode = #tpu.pipeline_mode<synchronous>, transform_indices = @transform_3, window_bounds = array<i64: 4, 1>}, {pipeline_mode = #tpu.pipeline_mode<synchronous>, transform_indices = @transform_4, window_bounds = array<i64: 9, 4, 4>}, {pipeline_mode = #tpu.pipeline_mode<synchronous>, transform_indices = @transform_5, window_bounds = array<i64: 4, 1>}, {transform_indices = @transform_6, window_bounds = array<i64: 1, 4, 256>}]} {
    %c0 = arith.constant 0 : index
    %c0_0 = arith.constant 0 : index
    %0 = vector.load %arg1[%c0, %c0_0] : memref<9x256xf32, #tpu.memory_space<vmem>>, vector<9x256xf32>
    %c0_1 = arith.constant 0 : index
    %c0_2 = arith.constant 0 : index
    %1 = vector.load %arg4[%c0_1, %c0_2] : memref<4x1xf32, #tpu.memory_space<vmem>>, vector<4x1xf32>
    %c0_3 = arith.constant 0 : index
    %c0_4 = arith.constant 0 : index
    %2 = vector.load %arg6[%c0_3, %c0_4] : memref<4x1xf32, #tpu.memory_space<vmem>>, vector<4x1xf32>
    %c0_i32 = arith.constant 0 : i32
    %3 = arith.index_cast %c0_i32 : i32 to index
    %c0_5 = arith.constant 0 : index
    %c0_6 = arith.constant 0 : index
    %4 = vector.load %arg2[%3, %c0_5, %c0_6] : memref<1x4x256xf32, #tpu.memory_space<vmem>>, vector<1x4x256xf32>
    %5 = vector.shape_cast %4 : vector<1x4x256xf32> to vector<4x256xf32>
    %cst = arith.constant 0.000000e+00 : f32
    %6 = vector.broadcast %cst : f32 to vector<4x256xf32>
    %c17_i32 = arith.constant 17 : i32
    %7 = tpu.dynamic_rotate %5 by %c17_i32 dim 1 : vector<4x256xf32>, i32 -> vector<4x256xf32>
    %8 = vector.extract_strided_slice %0 {offsets = [0, 0], sizes = [1, 256], strides = [1, 1]} : vector<9x256xf32> to vector<1x256xf32>
    %9 = vector.broadcast %8 : vector<1x256xf32> to vector<4x256xf32>
    %10 = arith.mulf %7, %9 : vector<4x256xf32>
    %c0_7 = arith.constant 0 : index
    %c0_8 = arith.constant 0 : index
    %c0_9 = arith.constant 0 : index
    %11 = vector.load %arg3[%c0_7, %c0_8, %c0_9] : memref<9x4x4xf32, #tpu.memory_space<vmem>>, vector<1x4x4xf32>
    %12 = vector.shape_cast %11 : vector<1x4x4xf32> to vector<4x4xf32>
    %cst_10 = arith.constant dense<0.000000e+00> : vector<4x256xf32>
    %13 = tpu.matmul %12, %10, %cst_10 {dimension_numbers = #tpu.dot_dimension_numbers<[1], [0], [0], [1], [0, 0, 1, 1], [], []>} : vector<4x4xf32>, vector<4x256xf32>, vector<4x256xf32> -> vector<4x256xf32>
    %14 = arith.addf %6, %13 : vector<4x256xf32>
    %c16_i32 = arith.constant 16 : i32
    %15 = tpu.dynamic_rotate %5 by %c16_i32 dim 1 : vector<4x256xf32>, i32 -> vector<4x256xf32>
    %16 = vector.extract_strided_slice %0 {offsets = [1, 0], sizes = [1, 256], strides = [1, 1]} : vector<9x256xf32> to vector<1x256xf32>
    %17 = vector.broadcast %16 : vector<1x256xf32> to vector<4x256xf32>
    %18 = arith.mulf %15, %17 : vector<4x256xf32>
    %c1 = arith.constant 1 : index
    %c0_11 = arith.constant 0 : index
    %c0_12 = arith.constant 0 : index
    %19 = vector.load %arg3[%c1, %c0_11, %c0_12] : memref<9x4x4xf32, #tpu.memory_space<vmem>>, vector<1x4x4xf32>
    %20 = vector.shape_cast %19 : vector<1x4x4xf32> to vector<4x4xf32>
    %cst_13 = arith.constant dense<0.000000e+00> : vector<4x256xf32>
    %21 = tpu.matmul %20, %18, %cst_13 {dimension_numbers = #tpu.dot_dimension_numbers<[1], [0], [0], [1], [0, 0, 1, 1], [], []>} : vector<4x4xf32>, vector<4x256xf32>, vector<4x256xf32> -> vector<4x256xf32>
    %22 = arith.addf %14, %21 : vector<4x256xf32>
    %c15_i32 = arith.constant 15 : i32
    %23 = tpu.dynamic_rotate %5 by %c15_i32 dim 1 : vector<4x256xf32>, i32 -> vector<4x256xf32>
    %24 = vector.extract_strided_slice %0 {offsets = [2, 0], sizes = [1, 256], strides = [1, 1]} : vector<9x256xf32> to vector<1x256xf32>
    %25 = vector.broadcast %24 : vector<1x256xf32> to vector<4x256xf32>
    %26 = arith.mulf %23, %25 : vector<4x256xf32>
    %c2 = arith.constant 2 : index
    %c0_14 = arith.constant 0 : index
    %c0_15 = arith.constant 0 : index
    %27 = vector.load %arg3[%c2, %c0_14, %c0_15] : memref<9x4x4xf32, #tpu.memory_space<vmem>>, vector<1x4x4xf32>
    %28 = vector.shape_cast %27 : vector<1x4x4xf32> to vector<4x4xf32>
    %cst_16 = arith.constant dense<0.000000e+00> : vector<4x256xf32>
    %29 = tpu.matmul %28, %26, %cst_16 {dimension_numbers = #tpu.dot_dimension_numbers<[1], [0], [0], [1], [0, 0, 1, 1], [], []>} : vector<4x4xf32>, vector<4x256xf32>, vector<4x256xf32> -> vector<4x256xf32>
    %30 = arith.addf %22, %29 : vector<4x256xf32>
    %c1_i32 = arith.constant 1 : i32
    %31 = tpu.dynamic_rotate %5 by %c1_i32 dim 1 : vector<4x256xf32>, i32 -> vector<4x256xf32>
    %32 = vector.extract_strided_slice %0 {offsets = [3, 0], sizes = [1, 256], strides = [1, 1]} : vector<9x256xf32> to vector<1x256xf32>
    %33 = vector.broadcast %32 : vector<1x256xf32> to vector<4x256xf32>
    %34 = arith.mulf %31, %33 : vector<4x256xf32>
    %c3 = arith.constant 3 : index
    %c0_17 = arith.constant 0 : index
    %c0_18 = arith.constant 0 : index
    %35 = vector.load %arg3[%c3, %c0_17, %c0_18] : memref<9x4x4xf32, #tpu.memory_space<vmem>>, vector<1x4x4xf32>
    %36 = vector.shape_cast %35 : vector<1x4x4xf32> to vector<4x4xf32>
    %cst_19 = arith.constant dense<0.000000e+00> : vector<4x256xf32>
    %37 = tpu.matmul %36, %34, %cst_19 {dimension_numbers = #tpu.dot_dimension_numbers<[1], [0], [0], [1], [0, 0, 1, 1], [], []>} : vector<4x4xf32>, vector<4x256xf32>, vector<4x256xf32> -> vector<4x256xf32>
    %38 = arith.addf %30, %37 : vector<4x256xf32>
    %c4 = arith.constant 4 : index
    %c0_20 = arith.constant 0 : index
    %c0_21 = arith.constant 0 : index
    %39 = vector.load %arg3[%c4, %c0_20, %c0_21] : memref<9x4x4xf32, #tpu.memory_space<vmem>>, vector<1x4x4xf32>
    %40 = vector.shape_cast %39 : vector<1x4x4xf32> to vector<4x4xf32>
    %cst_22 = arith.constant dense<0.000000e+00> : vector<4x256xf32>
    %41 = tpu.matmul %40, %5, %cst_22 {dimension_numbers = #tpu.dot_dimension_numbers<[1], [0], [0], [1], [0, 0, 1, 1], [], []>} : vector<4x4xf32>, vector<4x256xf32>, vector<4x256xf32> -> vector<4x256xf32>
    %42 = arith.addf %38, %41 : vector<4x256xf32>
    %c255_i32 = arith.constant 255 : i32
    %43 = tpu.dynamic_rotate %5 by %c255_i32 dim 1 : vector<4x256xf32>, i32 -> vector<4x256xf32>
    %44 = vector.extract_strided_slice %0 {offsets = [5, 0], sizes = [1, 256], strides = [1, 1]} : vector<9x256xf32> to vector<1x256xf32>
    %45 = vector.broadcast %44 : vector<1x256xf32> to vector<4x256xf32>
    %46 = arith.mulf %43, %45 : vector<4x256xf32>
    %c5 = arith.constant 5 : index
    %c0_23 = arith.constant 0 : index
    %c0_24 = arith.constant 0 : index
    %47 = vector.load %arg3[%c5, %c0_23, %c0_24] : memref<9x4x4xf32, #tpu.memory_space<vmem>>, vector<1x4x4xf32>
    %48 = vector.shape_cast %47 : vector<1x4x4xf32> to vector<4x4xf32>
    %cst_25 = arith.constant dense<0.000000e+00> : vector<4x256xf32>
    %49 = tpu.matmul %48, %46, %cst_25 {dimension_numbers = #tpu.dot_dimension_numbers<[1], [0], [0], [1], [0, 0, 1, 1], [], []>} : vector<4x4xf32>, vector<4x256xf32>, vector<4x256xf32> -> vector<4x256xf32>
    %50 = arith.addf %42, %49 : vector<4x256xf32>
    %c241_i32 = arith.constant 241 : i32
    %51 = tpu.dynamic_rotate %5 by %c241_i32 dim 1 : vector<4x256xf32>, i32 -> vector<4x256xf32>
    %52 = vector.extract_strided_slice %0 {offsets = [6, 0], sizes = [1, 256], strides = [1, 1]} : vector<9x256xf32> to vector<1x256xf32>
    %53 = vector.broadcast %52 : vector<1x256xf32> to vector<4x256xf32>
    %54 = arith.mulf %51, %53 : vector<4x256xf32>
    %c6 = arith.constant 6 : index
    %c0_26 = arith.constant 0 : index
    %c0_27 = arith.constant 0 : index
    %55 = vector.load %arg3[%c6, %c0_26, %c0_27] : memref<9x4x4xf32, #tpu.memory_space<vmem>>, vector<1x4x4xf32>
    %56 = vector.shape_cast %55 : vector<1x4x4xf32> to vector<4x4xf32>
    %cst_28 = arith.constant dense<0.000000e+00> : vector<4x256xf32>
    %57 = tpu.matmul %56, %54, %cst_28 {dimension_numbers = #tpu.dot_dimension_numbers<[1], [0], [0], [1], [0, 0, 1, 1], [], []>} : vector<4x4xf32>, vector<4x256xf32>, vector<4x256xf32> -> vector<4x256xf32>
    %58 = arith.addf %50, %57 : vector<4x256xf32>
    %c240_i32 = arith.constant 240 : i32
    %59 = tpu.dynamic_rotate %5 by %c240_i32 dim 1 : vector<4x256xf32>, i32 -> vector<4x256xf32>
    %60 = vector.extract_strided_slice %0 {offsets = [7, 0], sizes = [1, 256], strides = [1, 1]} : vector<9x256xf32> to vector<1x256xf32>
    %61 = vector.broadcast %60 : vector<1x256xf32> to vector<4x256xf32>
    %62 = arith.mulf %59, %61 : vector<4x256xf32>
    %c7 = arith.constant 7 : index
    %c0_29 = arith.constant 0 : index
    %c0_30 = arith.constant 0 : index
    %63 = vector.load %arg3[%c7, %c0_29, %c0_30] : memref<9x4x4xf32, #tpu.memory_space<vmem>>, vector<1x4x4xf32>
    %64 = vector.shape_cast %63 : vector<1x4x4xf32> to vector<4x4xf32>
    %cst_31 = arith.constant dense<0.000000e+00> : vector<4x256xf32>
    %65 = tpu.matmul %64, %62, %cst_31 {dimension_numbers = #tpu.dot_dimension_numbers<[1], [0], [0], [1], [0, 0, 1, 1], [], []>} : vector<4x4xf32>, vector<4x256xf32>, vector<4x256xf32> -> vector<4x256xf32>
    %66 = arith.addf %58, %65 : vector<4x256xf32>
    %c239_i32 = arith.constant 239 : i32
    %67 = tpu.dynamic_rotate %5 by %c239_i32 dim 1 : vector<4x256xf32>, i32 -> vector<4x256xf32>
    %68 = vector.extract_strided_slice %0 {offsets = [8, 0], sizes = [1, 256], strides = [1, 1]} : vector<9x256xf32> to vector<1x256xf32>
    %69 = vector.broadcast %68 : vector<1x256xf32> to vector<4x256xf32>
    %70 = arith.mulf %67, %69 : vector<4x256xf32>
    %c8 = arith.constant 8 : index
    %c0_32 = arith.constant 0 : index
    %c0_33 = arith.constant 0 : index
    %71 = vector.load %arg3[%c8, %c0_32, %c0_33] : memref<9x4x4xf32, #tpu.memory_space<vmem>>, vector<1x4x4xf32>
    %72 = vector.shape_cast %71 : vector<1x4x4xf32> to vector<4x4xf32>
    %cst_34 = arith.constant dense<0.000000e+00> : vector<4x256xf32>
    %73 = tpu.matmul %72, %70, %cst_34 {dimension_numbers = #tpu.dot_dimension_numbers<[1], [0], [0], [1], [0, 0, 1, 1], [], []>} : vector<4x4xf32>, vector<4x256xf32>, vector<4x256xf32> -> vector<4x256xf32>
    %74 = arith.addf %66, %73 : vector<4x256xf32>
    %75 = vector.broadcast %1 : vector<4x1xf32> to vector<4x256xf32>
    %76 = arith.addf %74, %75 : vector<4x256xf32>
    %cst_35 = arith.constant 0.000000e+00 : f32
    %77 = vector.broadcast %cst_35 : f32 to vector<4x256xf32>
    %78 = arith.maximumf %76, %77 : vector<4x256xf32>
    %cst_36 = arith.constant 0.000000e+00 : f32
    %79 = vector.broadcast %cst_36 : f32 to vector<4x256xf32>
    %c17_i32_37 = arith.constant 17 : i32
    %80 = tpu.dynamic_rotate %78 by %c17_i32_37 dim 1 : vector<4x256xf32>, i32 -> vector<4x256xf32>
    %81 = vector.extract_strided_slice %0 {offsets = [0, 0], sizes = [1, 256], strides = [1, 1]} : vector<9x256xf32> to vector<1x256xf32>
    %82 = vector.broadcast %81 : vector<1x256xf32> to vector<4x256xf32>
    %83 = arith.mulf %80, %82 : vector<4x256xf32>
    %c0_38 = arith.constant 0 : index
    %c0_39 = arith.constant 0 : index
    %c0_40 = arith.constant 0 : index
    %84 = vector.load %arg5[%c0_38, %c0_39, %c0_40] : memref<9x4x4xf32, #tpu.memory_space<vmem>>, vector<1x4x4xf32>
    %85 = vector.shape_cast %84 : vector<1x4x4xf32> to vector<4x4xf32>
    %cst_41 = arith.constant dense<0.000000e+00> : vector<4x256xf32>
    %86 = tpu.matmul %85, %83, %cst_41 {dimension_numbers = #tpu.dot_dimension_numbers<[1], [0], [0], [1], [0, 0, 1, 1], [], []>} : vector<4x4xf32>, vector<4x256xf32>, vector<4x256xf32> -> vector<4x256xf32>
    %87 = arith.addf %79, %86 : vector<4x256xf32>
    %c16_i32_42 = arith.constant 16 : i32
    %88 = tpu.dynamic_rotate %78 by %c16_i32_42 dim 1 : vector<4x256xf32>, i32 -> vector<4x256xf32>
    %89 = vector.extract_strided_slice %0 {offsets = [1, 0], sizes = [1, 256], strides = [1, 1]} : vector<9x256xf32> to vector<1x256xf32>
    %90 = vector.broadcast %89 : vector<1x256xf32> to vector<4x256xf32>
    %91 = arith.mulf %88, %90 : vector<4x256xf32>
    %c1_43 = arith.constant 1 : index
    %c0_44 = arith.constant 0 : index
    %c0_45 = arith.constant 0 : index
    %92 = vector.load %arg5[%c1_43, %c0_44, %c0_45] : memref<9x4x4xf32, #tpu.memory_space<vmem>>, vector<1x4x4xf32>
    %93 = vector.shape_cast %92 : vector<1x4x4xf32> to vector<4x4xf32>
    %cst_46 = arith.constant dense<0.000000e+00> : vector<4x256xf32>
    %94 = tpu.matmul %93, %91, %cst_46 {dimension_numbers = #tpu.dot_dimension_numbers<[1], [0], [0], [1], [0, 0, 1, 1], [], []>} : vector<4x4xf32>, vector<4x256xf32>, vector<4x256xf32> -> vector<4x256xf32>
    %95 = arith.addf %87, %94 : vector<4x256xf32>
    %c15_i32_47 = arith.constant 15 : i32
    %96 = tpu.dynamic_rotate %78 by %c15_i32_47 dim 1 : vector<4x256xf32>, i32 -> vector<4x256xf32>
    %97 = vector.extract_strided_slice %0 {offsets = [2, 0], sizes = [1, 256], strides = [1, 1]} : vector<9x256xf32> to vector<1x256xf32>
    %98 = vector.broadcast %97 : vector<1x256xf32> to vector<4x256xf32>
    %99 = arith.mulf %96, %98 : vector<4x256xf32>
    %c2_48 = arith.constant 2 : index
    %c0_49 = arith.constant 0 : index
    %c0_50 = arith.constant 0 : index
    %100 = vector.load %arg5[%c2_48, %c0_49, %c0_50] : memref<9x4x4xf32, #tpu.memory_space<vmem>>, vector<1x4x4xf32>
    %101 = vector.shape_cast %100 : vector<1x4x4xf32> to vector<4x4xf32>
    %cst_51 = arith.constant dense<0.000000e+00> : vector<4x256xf32>
    %102 = tpu.matmul %101, %99, %cst_51 {dimension_numbers = #tpu.dot_dimension_numbers<[1], [0], [0], [1], [0, 0, 1, 1], [], []>} : vector<4x4xf32>, vector<4x256xf32>, vector<4x256xf32> -> vector<4x256xf32>
    %103 = arith.addf %95, %102 : vector<4x256xf32>
    %c1_i32_52 = arith.constant 1 : i32
    %104 = tpu.dynamic_rotate %78 by %c1_i32_52 dim 1 : vector<4x256xf32>, i32 -> vector<4x256xf32>
    %105 = vector.extract_strided_slice %0 {offsets = [3, 0], sizes = [1, 256], strides = [1, 1]} : vector<9x256xf32> to vector<1x256xf32>
    %106 = vector.broadcast %105 : vector<1x256xf32> to vector<4x256xf32>
    %107 = arith.mulf %104, %106 : vector<4x256xf32>
    %c3_53 = arith.constant 3 : index
    %c0_54 = arith.constant 0 : index
    %c0_55 = arith.constant 0 : index
    %108 = vector.load %arg5[%c3_53, %c0_54, %c0_55] : memref<9x4x4xf32, #tpu.memory_space<vmem>>, vector<1x4x4xf32>
    %109 = vector.shape_cast %108 : vector<1x4x4xf32> to vector<4x4xf32>
    %cst_56 = arith.constant dense<0.000000e+00> : vector<4x256xf32>
    %110 = tpu.matmul %109, %107, %cst_56 {dimension_numbers = #tpu.dot_dimension_numbers<[1], [0], [0], [1], [0, 0, 1, 1], [], []>} : vector<4x4xf32>, vector<4x256xf32>, vector<4x256xf32> -> vector<4x256xf32>
    %111 = arith.addf %103, %110 : vector<4x256xf32>
    %c4_57 = arith.constant 4 : index
    %c0_58 = arith.constant 0 : index
    %c0_59 = arith.constant 0 : index
    %112 = vector.load %arg5[%c4_57, %c0_58, %c0_59] : memref<9x4x4xf32, #tpu.memory_space<vmem>>, vector<1x4x4xf32>
    %113 = vector.shape_cast %112 : vector<1x4x4xf32> to vector<4x4xf32>
    %cst_60 = arith.constant dense<0.000000e+00> : vector<4x256xf32>
    %114 = tpu.matmul %113, %78, %cst_60 {dimension_numbers = #tpu.dot_dimension_numbers<[1], [0], [0], [1], [0, 0, 1, 1], [], []>} : vector<4x4xf32>, vector<4x256xf32>, vector<4x256xf32> -> vector<4x256xf32>
    %115 = arith.addf %111, %114 : vector<4x256xf32>
    %c255_i32_61 = arith.constant 255 : i32
    %116 = tpu.dynamic_rotate %78 by %c255_i32_61 dim 1 : vector<4x256xf32>, i32 -> vector<4x256xf32>
    %117 = vector.extract_strided_slice %0 {offsets = [5, 0], sizes = [1, 256], strides = [1, 1]} : vector<9x256xf32> to vector<1x256xf32>
    %118 = vector.broadcast %117 : vector<1x256xf32> to vector<4x256xf32>
    %119 = arith.mulf %116, %118 : vector<4x256xf32>
    %c5_62 = arith.constant 5 : index
    %c0_63 = arith.constant 0 : index
    %c0_64 = arith.constant 0 : index
    %120 = vector.load %arg5[%c5_62, %c0_63, %c0_64] : memref<9x4x4xf32, #tpu.memory_space<vmem>>, vector<1x4x4xf32>
    %121 = vector.shape_cast %120 : vector<1x4x4xf32> to vector<4x4xf32>
    %cst_65 = arith.constant dense<0.000000e+00> : vector<4x256xf32>
    %122 = tpu.matmul %121, %119, %cst_65 {dimension_numbers = #tpu.dot_dimension_numbers<[1], [0], [0], [1], [0, 0, 1, 1], [], []>} : vector<4x4xf32>, vector<4x256xf32>, vector<4x256xf32> -> vector<4x256xf32>
    %123 = arith.addf %115, %122 : vector<4x256xf32>
    %c241_i32_66 = arith.constant 241 : i32
    %124 = tpu.dynamic_rotate %78 by %c241_i32_66 dim 1 : vector<4x256xf32>, i32 -> vector<4x256xf32>
    %125 = vector.extract_strided_slice %0 {offsets = [6, 0], sizes = [1, 256], strides = [1, 1]} : vector<9x256xf32> to vector<1x256xf32>
    %126 = vector.broadcast %125 : vector<1x256xf32> to vector<4x256xf32>
    %127 = arith.mulf %124, %126 : vector<4x256xf32>
    %c6_67 = arith.constant 6 : index
    %c0_68 = arith.constant 0 : index
    %c0_69 = arith.constant 0 : index
    %128 = vector.load %arg5[%c6_67, %c0_68, %c0_69] : memref<9x4x4xf32, #tpu.memory_space<vmem>>, vector<1x4x4xf32>
    %129 = vector.shape_cast %128 : vector<1x4x4xf32> to vector<4x4xf32>
    %cst_70 = arith.constant dense<0.000000e+00> : vector<4x256xf32>
    %130 = tpu.matmul %129, %127, %cst_70 {dimension_numbers = #tpu.dot_dimension_numbers<[1], [0], [0], [1], [0, 0, 1, 1], [], []>} : vector<4x4xf32>, vector<4x256xf32>, vector<4x256xf32> -> vector<4x256xf32>
    %131 = arith.addf %123, %130 : vector<4x256xf32>
    %c240_i32_71 = arith.constant 240 : i32
    %132 = tpu.dynamic_rotate %78 by %c240_i32_71 dim 1 : vector<4x256xf32>, i32 -> vector<4x256xf32>
    %133 = vector.extract_strided_slice %0 {offsets = [7, 0], sizes = [1, 256], strides = [1, 1]} : vector<9x256xf32> to vector<1x256xf32>
    %134 = vector.broadcast %133 : vector<1x256xf32> to vector<4x256xf32>
    %135 = arith.mulf %132, %134 : vector<4x256xf32>
    %c7_72 = arith.constant 7 : index
    %c0_73 = arith.constant 0 : index
    %c0_74 = arith.constant 0 : index
    %136 = vector.load %arg5[%c7_72, %c0_73, %c0_74] : memref<9x4x4xf32, #tpu.memory_space<vmem>>, vector<1x4x4xf32>
    %137 = vector.shape_cast %136 : vector<1x4x4xf32> to vector<4x4xf32>
    %cst_75 = arith.constant dense<0.000000e+00> : vector<4x256xf32>
    %138 = tpu.matmul %137, %135, %cst_75 {dimension_numbers = #tpu.dot_dimension_numbers<[1], [0], [0], [1], [0, 0, 1, 1], [], []>} : vector<4x4xf32>, vector<4x256xf32>, vector<4x256xf32> -> vector<4x256xf32>
    %139 = arith.addf %131, %138 : vector<4x256xf32>
    %c239_i32_76 = arith.constant 239 : i32
    %140 = tpu.dynamic_rotate %78 by %c239_i32_76 dim 1 : vector<4x256xf32>, i32 -> vector<4x256xf32>
    %141 = vector.extract_strided_slice %0 {offsets = [8, 0], sizes = [1, 256], strides = [1, 1]} : vector<9x256xf32> to vector<1x256xf32>
    %142 = vector.broadcast %141 : vector<1x256xf32> to vector<4x256xf32>
    %143 = arith.mulf %140, %142 : vector<4x256xf32>
    %c8_77 = arith.constant 8 : index
    %c0_78 = arith.constant 0 : index
    %c0_79 = arith.constant 0 : index
    %144 = vector.load %arg5[%c8_77, %c0_78, %c0_79] : memref<9x4x4xf32, #tpu.memory_space<vmem>>, vector<1x4x4xf32>
    %145 = vector.shape_cast %144 : vector<1x4x4xf32> to vector<4x4xf32>
    %cst_80 = arith.constant dense<0.000000e+00> : vector<4x256xf32>
    %146 = tpu.matmul %145, %143, %cst_80 {dimension_numbers = #tpu.dot_dimension_numbers<[1], [0], [0], [1], [0, 0, 1, 1], [], []>} : vector<4x4xf32>, vector<4x256xf32>, vector<4x256xf32> -> vector<4x256xf32>
    %147 = arith.addf %139, %146 : vector<4x256xf32>
    %148 = vector.broadcast %2 : vector<4x1xf32> to vector<4x256xf32>
    %149 = arith.addf %147, %148 : vector<4x256xf32>
    %150 = arith.addf %149, %5 : vector<4x256xf32>
    %151 = arith.index_cast %c0_i32 : i32 to index
    %c0_81 = arith.constant 0 : index
    %c0_82 = arith.constant 0 : index
    %152 = vector.load %arg7[%151, %c0_81, %c0_82] : memref<1x4x256xf32, #tpu.memory_space<vmem>>, vector<1x4x256xf32>
    %153 = vector.shape_cast %152 : vector<1x4x256xf32> to vector<4x256xf32>
    %154 = vector.shape_cast %150 : vector<4x256xf32> to vector<1x4x256xf32>
    tpu.vector_store %arg7[%151, %c0_81, %c0_82], %154 {strides = array<i32>} : memref<1x4x256xf32, #tpu.memory_space<vmem>>, vector<1x4x256xf32>,
    %c1_i32_83 = arith.constant 1 : i32
    return
  }
  func.func @transform_0(%arg0: i32) -> (i32, i32) {
    %c0_i32 = arith.constant 0 : i32
    %c0_i32_0 = arith.constant 0 : i32
    %c0_i32_1 = arith.constant 0 : i32
    return %c0_i32, %c0_i32_0 : i32, i32
  }
  func.func @transform_1(%arg0: i32) -> (i32, i32, i32) {
    %c0_i32 = arith.constant 0 : i32
    %c0_i32_0 = arith.constant 0 : i32
    %c0_i32_1 = arith.constant 0 : i32
    return %arg0, %c0_i32, %c0_i32_0 : i32, i32, i32
  }
  func.func @transform_2(%arg0: i32) -> (i32, i32, i32) {
    %c0_i32 = arith.constant 0 : i32
    %c0_i32_0 = arith.constant 0 : i32
    %c0_i32_1 = arith.constant 0 : i32
    %c0_i32_2 = arith.constant 0 : i32
    return %c0_i32, %c0_i32_0, %c0_i32_1 : i32, i32, i32
  }
  func.func @transform_3(%arg0: i32) -> (i32, i32) {
    %c0_i32 = arith.constant 0 : i32
    %c0_i32_0 = arith.constant 0 : i32
    %c0_i32_1 = arith.constant 0 : i32
    return %c0_i32, %c0_i32_0 : i32, i32
  }
  func.func @transform_4(%arg0: i32) -> (i32, i32, i32) {
    %c0_i32 = arith.constant 0 : i32
    %c0_i32_0 = arith.constant 0 : i32
    %c0_i32_1 = arith.constant 0 : i32
    %c0_i32_2 = arith.constant 0 : i32
    return %c0_i32, %c0_i32_0, %c0_i32_1 : i32, i32, i32
  }
  func.func @transform_5(%arg0: i32) -> (i32, i32) {
    %c0_i32 = arith.constant 0 : i32
    %c0_i32_0 = arith.constant 0 : i32
    %c0_i32_1 = arith.constant 0 : i32
    return %c0_i32, %c0_i32_0 : i32, i32
  }
  func.func @transform_6(%arg0: i32) -> (i32, i32, i32) {
    %c0_i32 = arith.constant 0 : i32
    %c0_i32_0 = arith.constant 0 : i32
    %c0_i32_1 = arith.constant 0 : i32
    return %arg0, %c0_i32, %c0_i32_0 : i32, i32, i32
  }
}

</mosaic_0001>

<bundles_post_ra>
// kernel: tpu_custom_call.1
= control target key start
LH: loop header
LB: loop body
LE: loop exit
PB: predicated region body
PF: predicated region fallthrough
CT: control target
= control target key end

     0   :  { %11 = vsyncpa [#allocation3], 0  ;;  %s2760_s0 = inlined_call_operand.vmem [shape: f32[9,256], index: 0, kind: input, shape index: {}]   ;;  %s2761_s1 = inlined_call_operand.vmem [shape: f32[2,4,256], index: 1, kind: input, shape index: {}]   ;;  %s2762_s2 = inlined_call_operand.vmem [shape: f32[9,4,4], index: 2, kind: input, shape index: {}]   ;;  %s2763_s3 = inlined_call_operand.vmem [shape: f32[4,1], index: 3, kind: input, shape index: {}]   ;;  %s2764_s4 = inlined_call_operand.vmem [shape: f32[9,4,4], index: 4, kind: input, shape index: {}]   ;;  %s2765_s5 = inlined_call_operand.vmem [shape: f32[4,1], index: 5, kind: input, shape index: {}]   ;;  %s2766_s6 = inlined_call_operand.hbm [shape: f32[2,4,256], index: 6, kind: output, shape index: {}]  }
   0x1   :  { %13 = vsyncpa [#allocation3 + $0x1], 0  ;;  %s2306_s21 = smov 0   ;;  %s2308_s22 = smov 0  }
   0x2   :  { %s2310_s23 = smov 0   ;;  %s2312_s24 = smov 0  }
   0x3 LB: > { %s2327_s25 = sadd.s32 4294967295, %s2258_s24   ;;  %s2061_s26 = sadd.s32 4294967294, %s2258_s24   ;;  %s2258_s24 = sphi %s2312_s24, %s2772_s24   ;;  %s2254_s23 = sphi %s2310_s23, %s2771_s23   ;;  %s2250_s22 = sphi %s2308_s22, %s2770_s22   ;;  %s2246_s21 = sphi %s2306_s21, %s2769_s21  }
   0x4   : > { %s2331_s27 = sadd.s32 1, %s2258_s24   ;;  %s157_s28 = sadd.s32 1, %s2254_s23 }
   0x5   : > { %s154_s29 = ssub.s32 %s2258_s24, %s2331_s27  ;;  %p167_p0 = scmp.ne.s32.totalorder %s2254_s23, %s2250_s22 }
   0x6   : > { %p155_p1 = scmp.eq.s32.totalorder %s154_s29, 0  ;;  %p168_p2 = scmp.eq.s32.totalorder %s2327_s25, 1 }
   0x7   : > { %p173_p3 = scmp.ne.s32.totalorder %s2250_s22, %s2246_s21  ;;  %p174_p4 = scmp.eq.s32.totalorder %s2061_s26, 1 }
   0x8   : > { %s2342_s30 = scalar_select %p155_p1, %s2254_s23, %s157_s28  }
   0x9   : > { %p2344_p5 = por %p168_p2, %p167_p0  ;;  %p2348_p6 = por %p174_p4, %p173_p3 }
   0xa   : > { %p2064_p7 = scmp.ge.s32.totalorder %s2258_s24, 1  ;;  %p215_p8 = scmp.lt.s32.totalorder %s2258_s24, 3 }
   0xc   : > { %p216_p9 = pnand %p2064_p7, %p215_p8 }
   0xd   : > { %p245_p10 = scmp.lt.s32.totalorder (!%p216_p9), %s2327_s25, 1  ;;  %s2260_s14 = smov (!%p216_p9), 17  }
   0xe   : > { %219 = sbr.rel (%p216_p9) target bundleno = 739 (0x2e3), region = 44  ;;  %s2261_s15 = smov (!%p216_p9), 16  }
   0xf   : > { %s2263_s16 = smov (!%p216_p9), 15   ;;  %s2264_s17 = smov (!%p216_p9), 1  }
  0x10   : > { %s2265_s18 = smov (!%p216_p9), 127   ;;  %s2266_s19 = smov (!%p216_p9), 113  }
  0x11   : > { %s2268_s20 = smov (!%p216_p9), 112   ;;  %s2269_s26 = smov (!%p216_p9), 111  }
  0x13   : > { %s246_s9 = scalar_select %p245_p10, %s2327_s25, 1  ;;  %v2262_v2 = vmov 0.0   ;;  %v2267_v3 = vmov 0   ;;  %v254_v4 = vld [vmem:[%s2763_s3] sm:$0xf]  ;;  %v264_v5 = vlaneseq  ;;  %v2415_v10 = vld [vmem:[%s2760_s0 + $0x8] sm:$0xff] }
  0x14   : > { %374 = vmatprep.mubr.f32.mxu0 %v2262_v2  ;;  %454 = vmatprep.mubr.f32.mxu1 %v2262_v2  ;;  %v2410_v9 = vld [vmem:[%s2760_s0] sm:$0xff]  ;;  %vm303_vm1 = vcmask 1043456   ;;  %vm299_vm5 = vcmask 31744   ;;  %v2075_v52 = vld [vmem:[%s2762_s2 + $0x8] sm:$0xf] }
  0x15   : > { %s2145_s10 = sshll.u32 %s246_s9, 3  ;;  %2196 = vset.pattern.permute.xlu0 %v2267_v3  ;;  %v2402_v6 = vshrl.u32 %v264_v5, 7  ;;  %v2404_v7 = vand.u32 127, %v264_v5  ;;  %v279_v26 = vld [vmem:[%s2762_s2] sm:$0xf] }
  0x16   : > { %s249_s13 = scalar_lea.vmem %s2761_s1, %s2145_s10  ;;  %v2068_v40 = vld [vmem:[%s2762_s2 + $0x4] sm:$0xf]  ;;  %v2079_v53 = vld [vmem:[%s2762_s2 + $0xc] sm:$0xf]  ;;  %v2083_v63 = vld [vmem:[%s2762_s2 + $0x10] sm:$0xf] }
  0x17   : > { %v2359_v0 = vld [vmem:[%s249_s13] sm:$0xff]  ;;  %v271_v8 = vsub.s32 0, %v2402_v6  ;;  %vm266_vm0 = vcmp.lt.s32.totalorder %v2404_v7, 17  ;;  %v289_v15 = vsub.s32 1, %v2402_v6  ;;  %v470_v18 = vsub.s32 2, %v2402_v6 }
  0x18   : > { %260 = vrot.lane.b32.xlu1 %v2359_v0, %s2260_s14  ;;  %280 = vrot.lane.b32.xlu0 %v2359_v0, %s2261_s15  ;;  %v2367_v1 = vcombine.high %v2359_v0, %v2359_v0  ;;  %v571_v19 = vsub.s32 3, %v2402_v6  ;;  %vm465_vm2 = vcmp.lt.s32.totalorder %v2404_v7, 15  ;;  %vm284_vm3 = vcmp.lt.s32.totalorder %v2404_v7, 16  ;;  %v2087_v3 = vld [vmem:[%s2762_s2 + $0x14] sm:$0xf] }
  0x19   : > { %v2419_v13 = vrot.slane %v2410_v9, %v271_v8  ;;  %v2422_v14 = vrot.slane %v2415_v10, %v271_v8  ;;  %v2436_v24 = vrot.slane %v2410_v9, %v289_v15  ;;  %v2439_v25 = vrot.slane %v2415_v10, %v289_v15 }
  0x1a   : > { %vm566_vm4 = vcmp.lt.s32.totalorder %v2404_v7, 1  ;;  %v2447_v27 = vrot.slane %v2410_v9, %v470_v18  ;;  %v2450_v28 = vrot.slane %v2415_v10, %v470_v18  ;;  %v2453_v31 = vrot.slane %v2410_v9, %v571_v19 }
  0x1b   : > { %v754_v32 = vsub.s32 5, %v2402_v6  ;;  %v2468_v39 = vrot.slane %v2415_v10, %v571_v19  ;;  %v855_v48 = vsub.s32 6, %v2402_v6  ;;  %vm749_vm6 = vcmp.lt.s32.totalorder %v2404_v7, 127 }
  0x1c   : > { %461 = vrot.lane.b32.xlu0 %v2359_v0, %s2263_s16  ;;  %262 = vrot.lane.b32.xlu1 %v2367_v1, %s2260_s14  ;;  %v956_v59 = vsub.s32 7, %v2402_v6  ;;  %vm850_vm7 = vcmp.lt.s32.totalorder %v2404_v7, 113  ;;  %vm951_vm8 = vcmp.lt.s32.totalorder %v2404_v7, 112  ;;  %vm1052_vm9 = vcmp.lt.s32.totalorder %v2404_v7, 111 }
  0x1d   : > { %v2478_v44 = vrot.slane %v2410_v9, %v754_v32  ;;  %v2493_v51 = vrot.slane %v2415_v10, %v754_v32  ;;  %v2512_v58 = vrot.slane %v2410_v9, %v855_v48  ;;  %v2521_v62 = vrot.slane %v2415_v10, %v855_v48 }
  0x20   : > { %463 = vrot.lane.b32.xlu1 %v2367_v1, %s2263_s16  ;;  %282 = vrot.lane.b32.xlu0 %v2367_v1, %s2261_s15 }
  0x24   : > { %564 = vrot.lane.b32.xlu1 %v2367_v1, %s2264_s17  ;;  %562 = vrot.lane.b32.xlu0 %v2359_v0, %s2264_s17 }
  0x28   : > { %747 = vrot.lane.b32.xlu1 %v2367_v1, %s2265_s18  ;;  %745 = vrot.lane.b32.xlu0 %v2359_v0, %s2265_s18 }
  0x2c   : > { %848 = vrot.lane.b32.xlu1 %v2367_v1, %s2266_s19  ;;  %846 = vrot.lane.b32.xlu0 %v2359_v0, %s2266_s19 }
  0x30   : > { %949 = vrot.lane.b32.xlu1 %v2367_v1, %s2268_s20  ;;  %947 = vrot.lane.b32.xlu0 %v2359_v0, %s2268_s20 }
  0x34   : > { %1050 = vrot.lane.b32.xlu1 %v2367_v1, %s2269_s26  ;;  %1048 = vrot.lane.b32.xlu0 %v2359_v0, %s2269_s26 }
  0x38   : > { %1151 = vperm.xlu0 %2196, %v254_v4  }
  0x8a   : > { %v261_v11 = vpop.permute.xlu1 %260  ;;  %v281_v12 = vpop.permute.xlu0 %280 }
  0x8e   : > { %v462_v16 = vpop.permute.xlu0 %461  ;;  %v263_v17 = vpop.permute.xlu1 %262 }
  0x8f   : > { %v267_v20 = vsel %vm266_vm0, %v261_v11, %v263_v17  ;;  %v268_v21 = vsel %vm266_vm0, %v263_v17, %v261_v11  ;;  %v2540_v11 = vrot.slane %v2410_v9, %v956_v59  ;;  %v2091_v9 = vld [vmem:[%s2762_s2 + $0x18] sm:$0xf] }
  0x90   : > { %v277_v22 = vmul.f32 %v2419_v13, %v268_v21  ;;  %v278_v23 = vmul.f32 %v2422_v14, %v267_v20 }
  0x92   : > { %2072 = vmatprep.subr.msk.mxu1 %vm303_vm1, %v278_v23  ;;  %v464_v29 = vpop.permute.xlu1 %463  ;;  %v283_v30 = vpop.permute.xlu0 %282  ;;  %v2573_v23 = vld [vmem:[%s2760_s0 + $0x18] ss:$0 sm:$0xff] }
  0x93   : > { %v466_v33 = vsel %vm465_vm2, %v462_v16, %v464_v29  ;;  %v285_v34 = vsel %vm284_vm3, %v281_v12, %v283_v30  ;;  %v286_v35 = vsel %vm284_vm3, %v283_v30, %v281_v12  ;;  %2073 = vmatpush1.msk.msra.mxu1 %vm303_vm1, %v277_v22  ;;  %v467_v36 = vsel %vm465_vm2, %v464_v29, %v462_v16  ;;  %v2568_v22 = vld [vmem:[%s2760_s0 + $0x10] ss:$0 sm:$0xff] }
  0x94   : > { %v295_v37 = vmul.f32 %v2436_v24, %v286_v35  ;;  %v296_v38 = vmul.f32 %v2439_v25, %v285_v34  ;;  %2074 = vmatmul.mubr.msk.f32.vlgmr.msra.gmra.mxu1 %vm299_vm5, %v279_v26  ;;  %v477_v41 = vmul.f32 %v2450_v28, %v466_v33  ;;  %v476_v45 = vmul.f32 %v2447_v27, %v467_v36  ;;  %v2095_v26 = vld [vmem:[%s2762_s2 + $0x1c] sm:$0xf]  ;;  %v2101_v36 = vld [vmem:[%s2762_s2 + $0x20] sm:$0xf] }
  0x95   : > { %654 = vmatprep.mubr.f32.mxu1 %v2262_v2  ;;  %v2548_v16 = vrot.slane %v2415_v10, %v956_v59 }
  0x96   : > { %v565_v42 = vpop.permute.xlu1 %564  ;;  %2069 = vmatprep.subr.msk.mxu0 %vm303_vm1, %v296_v38  ;;  %v563_v43 = vpop.permute.xlu0 %562 }
  0x97   : > { %v567_v46 = vsel %vm566_vm4, %v563_v43, %v565_v42  ;;  %v568_v47 = vsel %vm566_vm4, %v565_v42, %v563_v43  ;;  %2070 = vmatpush1.msk.msra.mxu0 %vm303_vm1, %v295_v37 }
  0x98   : > { %v577_v49 = vmul.f32 %v2453_v31, %v568_v47  ;;  %v578_v50 = vmul.f32 %v2468_v39, %v567_v46  ;;  %2071 = vmatmul.mubr.msk.f32.vlgmr.msra.gmra.mxu0 %vm299_vm5, %v2068_v40  ;;  %2076 = vmatprep.subr.msk.mxu0 %vm303_vm1, %v477_v41 }
  0x99   : > { %2077 = vmatpush1.msk.msra.mxu0 %vm303_vm1, %v476_v45  ;;  %553 = vmatprep.mubr.f32.mxu0 %v2262_v2 }
  0x9a   : > { %v748_v54 = vpop.permute.xlu1 %747  ;;  %2080 = vmatprep.subr.msk.mxu1 %vm303_vm1, %v578_v50  ;;  %v746_v55 = vpop.permute.xlu0 %745  ;;  %2084 = vmatprep.subr.msk.mxu0 %vm303_vm1, %v2367_v1 }
  0x9b   : > { %v750_v56 = vsel %vm749_vm6, %v746_v55, %v748_v54  ;;  %v751_v57 = vsel %vm749_vm6, %v748_v54, %v746_v55  ;;  %2081 = vmatpush1.msk.msra.mxu1 %vm303_vm1, %v577_v49 }
  0x9c   : > { %v760_v60 = vmul.f32 %v2478_v44, %v750_v56  ;;  %v761_v61 = vmul.f32 %v2493_v51, %v751_v57  ;;  %2078 = vmatmul.mubr.msk.f32.vlgmr.msra.gmra.mxu0 %vm299_vm5, %v2075_v52  ;;  %2082 = vmatmul.mubr.msk.f32.vlgmr.msra.gmra.mxu1 %vm299_vm5, %v2079_v53 }
  0x9d   : > { %2085 = vmatpush1.msk.msra.mxu0 %vm303_vm1, %v2359_v0  ;;  %736 = vmatprep.mubr.f32.mxu0 %v2262_v2 }
  0x9e   : > { %v849_v4 = vpop.permute.xlu1 %848  ;;  %2088 = vmatprep.subr.msk.mxu1 %vm303_vm1, %v761_v61  ;;  %v847_v5 = vpop.permute.xlu0 %846  ;;  %837 = vmatprep.mubr.f32.mxu1 %v2262_v2 }
  0x9f   : > { %v851_v6 = vsel %vm850_vm7, %v847_v5, %v849_v4  ;;  %v852_v8 = vsel %vm850_vm7, %v849_v4, %v847_v5  ;;  %2089 = vmatpush1.msk.msra.mxu1 %vm303_vm1, %v760_v60 }
  0xa0   : > { %v861_v12 = vmul.f32 %v2512_v58, %v851_v6  ;;  %v862_v15 = vmul.f32 %v2521_v62, %v852_v8  ;;  %2086 = vmatmul.mubr.msk.f32.vlgmr.msra.gmra.mxu0 %vm299_vm5, %v2083_v63  ;;  %2090 = vmatmul.mubr.msk.f32.vlgmr.msra.gmra.mxu1 %vm299_vm5, %v2087_v3 }
  0xa1   : > { %938 = vmatprep.mubr.f32.mxu0 %v2262_v2  ;;  %1039 = vmatprep.mubr.f32.mxu1 %v2262_v2 }
  0xa2   : > { %v950_v17 = vpop.permute.xlu1 %949  ;;  %2092 = vmatprep.subr.msk.mxu0 %vm303_vm1, %v862_v15  ;;  %v948_v18 = vpop.permute.xlu0 %947 }
  0xa3   : > { %v952_v19 = vsel %vm951_vm8, %v948_v18, %v950_v17  ;;  %v953_v20 = vsel %vm951_vm8, %v950_v17, %v948_v18  ;;  %2093 = vmatpush1.msk.msra.mxu0 %vm303_vm1, %v861_v12 }
  0xa4   : > { %v962_v10 = vmul.f32 %v2540_v11, %v952_v19  ;;  %v963_v21 = vmul.f32 %v2548_v16, %v953_v20  ;;  %2094 = vmatmul.mubr.msk.f32.vlgmr.msra.gmra.mxu0 %vm299_vm5, %v2091_v9 }
  0xa5   : > { %1140 = vmatprep.mubr.f32.mxu0 %v2262_v2 }
  0xa6   : > { %v1051_v29 = vpop.permute.xlu1 %1050  ;;  %2096 = vmatprep.subr.msk.mxu1 %vm303_vm1, %v963_v21  ;;  %v1049_v30 = vpop.permute.xlu0 %1048 }
  0xa7   : > { %v1053_v32 = vsel %vm1052_vm9, %v1049_v30, %v1051_v29  ;;  %v1054_v33 = vsel %vm1052_vm9, %v1051_v29, %v1049_v30  ;;  %2097 = vmatpush1.msk.msra.mxu1 %vm303_vm1, %v962_v10 }
  0xa8   : > { %v1063_v34 = vmul.f32 %v2568_v22, %v1053_v32  ;;  %v1064_v35 = vmul.f32 %v2573_v23, %v1054_v33  ;;  %2098 = vmatmul.mubr.msk.f32.vlgmr.msra.gmra.mxu1 %vm299_vm5, %v2095_v26  ;;  %v255_v32 = vld [vmem:[%s2765_s5] sm:$0xf] }
  0xa9   : > { %1250 = vmatprep.mubr.f32.mxu1 %v2262_v2 }
  0xaa   : > { %2102 = vmatprep.subr.msk.mxu0 %vm303_vm1, %v1064_v35 }
  0xab   : > { %2103 = vmatpush1.msk.msra.mxu0 %vm303_vm1, %v1063_v34 }
  0xac   : > { %2104 = vmatmul.mubr.msk.f32.vlgmr.msra.gmra.mxu0 %vm299_vm5, %v2101_v36 }
  0xad   : > { %1330 = vmatprep.mubr.f32.mxu0 %v2262_v2 }
  0xb3   : > { %v1152_v17 = vpop.permute.xlu0 %1151 }
 0x154   : > { %v456_v37 = vpop.f32.mrf.mxu1 }
 0x156   : > { %v458_v40 = vpop.f32.mrf.mxu1 }
 0x158   : > { %v376_v38 = vpop.f32.mrf.mxu0 }
 0x159   : > { %v457_v41 = vadd.f32 %v456_v37, %v376_v38 }
 0x15a   : > { %v378_v42 = vpop.f32.mrf.mxu0 }
 0x15b   : > { %v459_v43 = vadd.f32 %v458_v40, %v378_v42  ;;  %v2105_v42 = vld [vmem:[%s2764_s4 + $0x4] sm:$0xf] }
 0x15c   : > { %v555_v45 = vpop.f32.mrf.mxu0  ;;  %v656_v46 = vpop.f32.mrf.mxu1 }
 0x15d   : > { %v560_v47 = vadd.f32 %v555_v45, %v457_v41 }
 0x15e   : > { %v557_v48 = vpop.f32.mrf.mxu0  ;;  %v658_v49 = vpop.f32.mrf.mxu1 }
 0x15f   : > { %v561_v50 = vadd.f32 %v557_v48, %v459_v43  ;;  %v661_v52 = vadd.f32 %v656_v46, %v560_v47  ;;  %v1166_v48 = vld [vmem:[%s2764_s4] sm:$0xf] }
 0x160   : > { %v738_v53 = vpop.f32.mrf.mxu0  ;;  %v839_v54 = vpop.f32.mrf.mxu1 }
 0x161   : > { %v662_v55 = vadd.f32 %v658_v49, %v561_v50  ;;  %v743_v56 = vadd.f32 %v738_v53, %v661_v52 }
 0x162   : > { %v740_v57 = vpop.f32.mrf.mxu0  ;;  %v841_v61 = vpop.f32.mrf.mxu1 }
 0x163   : > { %v744_v59 = vadd.f32 %v740_v57, %v662_v55  ;;  %v844_v60 = vadd.f32 %v839_v54, %v743_v56  ;;  %v2112_v54 = vld [vmem:[%s2764_s4 + $0x8] sm:$0xf] }
 0x164   : > { %v940_v63 = vpop.f32.mrf.mxu0 }
 0x165   : > { %v845_v3 = vadd.f32 %v841_v61, %v744_v59  ;;  %v945_v4 = vadd.f32 %v940_v63, %v844_v60  ;;  %v2116_v59 = vld [vmem:[%s2764_s4 + $0xc] sm:$0xf]  ;;  %v2120_v60 = vld [vmem:[%s2764_s4 + $0x10] sm:$0xf] }
 0x166   : > { %v942_v5 = vpop.f32.mrf.mxu0 }
 0x167   : > { %v946_v12 = vadd.f32 %v942_v5, %v845_v3  ;;  %v2124_v5 = vld [vmem:[%s2764_s4 + $0x14] sm:$0xf] }
 0x168   : > { %v1041_v6 = vpop.f32.mrf.mxu1 }
 0x169   : > { %v1046_v15 = vadd.f32 %v1041_v6, %v945_v4 }
 0x16a   : > { %v1043_v8 = vpop.f32.mrf.mxu1 }
 0x16b   : > { %v1047_v18 = vadd.f32 %v1043_v8, %v946_v12 }
 0x16c   : > { %v1142_v9 = vpop.f32.mrf.mxu0 }
 0x16d   : > { %v1147_v19 = vadd.f32 %v1142_v9, %v1046_v15  ;;  %v2128_v9 = vld [vmem:[%s2764_s4 + $0x18] sm:$0xf] }
 0x16e   : > { %v1144_v20 = vpop.f32.mrf.mxu0 }
 0x16f   : > { %v1148_v10 = vadd.f32 %v1144_v20, %v1047_v18  ;;  %v1154_v21 = vadd.f32 %v1152_v17, %v1147_v19  ;;  %v2132_v20 = vld [vmem:[%s2764_s4 + $0x1c] sm:$0xf] }
 0x171   : > { %v1155_v26 = vadd.f32 %v1152_v17, %v1148_v10  ;;  %v1156_v29 = vmax.f32 %v1154_v21, 0.0 }
 0x173   : > { %1158 = vrot.lane.b32.xlu0 %v1156_v29, %s2260_s14  ;;  %1167 = vrot.lane.b32.xlu1 %v1156_v29, %s2261_s15  ;;  %v1157_v30 = vmax.f32 %v1155_v26, 0.0 }
 0x177   : > { %1337 = vrot.lane.b32.xlu0 %v1156_v29, %s2263_s16  ;;  %1169 = vrot.lane.b32.xlu1 %v1157_v30, %s2261_s15 }
 0x17b   : > { %1429 = vrot.lane.b32.xlu0 %v1156_v29, %s2264_s17  ;;  %1160 = vrot.lane.b32.xlu1 %v1157_v30, %s2260_s14 }
 0x17f   : > { %1605 = vrot.lane.b32.xlu0 %v1156_v29, %s2265_s18  ;;  %1339 = vrot.lane.b32.xlu1 %v1157_v30, %s2263_s16 }
 0x183   : > { %1697 = vrot.lane.b32.xlu0 %v1156_v29, %s2266_s19  ;;  %1431 = vrot.lane.b32.xlu1 %v1157_v30, %s2264_s17 }
 0x187   : > { %1789 = vrot.lane.b32.xlu0 %v1156_v29, %s2268_s20  ;;  %1607 = vrot.lane.b32.xlu1 %v1157_v30, %s2265_s18  ;;  %s242_s18 = sand.u32 1, %s2250_s22  }
 0x188   : > { %s1988_s12 = scalar_lea.sflag [#allocation3], %s242_s18 }
 0x18b   : > { %1881 = vrot.lane.b32.xlu0 %v1156_v29, %s2269_s26  ;;  %1699 = vrot.lane.b32.xlu1 %v1157_v30, %s2266_s19  ;;  %s2065_s19 = sshll.u32 %s242_s18, 3 }
 0x18f   : > { %1975 = vperm.xlu0 %2196, %v255_v32   ;;  %1791 = vrot.lane.b32.xlu1 %v1157_v30, %s2268_s20  ;;  %s2146_s20 = sshll.u32 %s2327_s25, 7  ;;  %s2270_s25 = smov [#allocation2]  }
 0x190   : > { %s2000_s11 = scalar_lea.hbm %s2766_s6, %s2146_s20  ;;  %s2202_s15 = sshll.u32 %s2270_s25, 4  ;;  %s2203_s15 = int_to_ptr.vmem [resolvable:$false] %s2202_s15 }
 0x191   : > { %s2204_s28 = scalar_lea.vmem %s2203_s15, 256 }
 0x193   : > { %1883 = vrot.lane.b32.xlu1 %v1157_v30, %s2269_s26  ;;  %s244_s26 = scalar_lea.vmem [#allocation2], %s2065_s19 }
 0x194   : > { %s2002_s29 = sshll.u32 %s244_s26, 4  ;;  %s2003_s29 = int_to_ptr.vmem [resolvable:$true] %s2002_s29 }
 0x195   : > { %s2198_s13 = scalar_lea.vmem %s2003_s29, 128  ;;  %p2205_p0 = scmp.lt.s32.totalorder %s2003_s29, %s2203_s15 }
 0x196   : > { %p2199_p11 = scmp.ne.s32.totalorder %s2003_s29, %s2198_s13  ;;  %p2206_p1 = scmp.lt.s32.totalorder %s2204_s28, %s2198_s13 }
 0x198   : > { %p2200_p12 = pnand %p2199_p11, %p2344_p5  ;;  %p2207_p2 = por %p2206_p1, %p2205_p0 }
 0x19a   : > { %p2201_p13 = pneg %p2200_p12 }
 0x19c   : > { %p2208_p3 = pnand %p2207_p2, %p2201_p13 }
 0x1e5   : > { %v1159_v33 = vpop.permute.xlu0 %1158  ;;  %v1168_v34 = vpop.permute.xlu1 %1167 }
 0x1e9   : > { %v1338_v35 = vpop.permute.xlu0 %1337  ;;  %v1170_v36 = vpop.permute.xlu1 %1169 }
 0x1ea   : > { %v1171_v37 = vsel %vm284_vm3, %v1168_v34, %v1170_v36  ;;  %v1172_v38 = vsel %vm284_vm3, %v1170_v36, %v1168_v34 }
 0x1eb   : > { %v1173_v40 = vmul.f32 %v1172_v38, %v2436_v24  ;;  %v1174_v41 = vmul.f32 %v1171_v37, %v2439_v25 }
 0x1ed   : > { %v1430_v43 = vpop.permute.xlu0 %1429  ;;  %2106 = vmatprep.subr.msk.mxu1 %vm303_vm1, %v1174_v41  ;;  %v1161_v45 = vpop.permute.xlu1 %1160 }
 0x1ee   : > { %v1162_v46 = vsel %vm266_vm0, %v1159_v33, %v1161_v45  ;;  %v1163_v47 = vsel %vm266_vm0, %v1161_v45, %v1159_v33  ;;  %2107 = vmatpush1.msk.msra.mxu1 %vm303_vm1, %v1173_v40 }
 0x1ef   : > { %v1164_v24 = vmul.f32 %v1163_v47, %v2419_v13  ;;  %v1165_v25 = vmul.f32 %v1162_v46, %v2422_v14  ;;  %2108 = vmatmul.mubr.msk.f32.vlgmr.msra.gmra.mxu1 %vm299_vm5, %v2105_v42 }
 0x1f0   : > { %1420 = vmatprep.mubr.f32.mxu1 %v2262_v2 }
 0x1f1   : > { %2109 = vmatprep.subr.msk.mxu0 %vm303_vm1, %v1165_v25  ;;  %v1340_v49 = vpop.permute.xlu1 %1339  ;;  %v1606_v13 = vpop.permute.xlu0 %1605 }
 0x1f2   : > { %v1341_v50 = vsel %vm465_vm2, %v1338_v35, %v1340_v49  ;;  %v1342_v52 = vsel %vm465_vm2, %v1340_v49, %v1338_v35  ;;  %2110 = vmatpush1.msk.msra.mxu0 %vm303_vm1, %v1164_v24 }
 0x1f3   : > { %v1343_v14 = vmul.f32 %v1342_v52, %v2447_v27  ;;  %v1344_v53 = vmul.f32 %v1341_v50, %v2450_v28  ;;  %2111 = vmatmul.mubr.msk.f32.vlgmr.msra.gmra.mxu0 %vm299_vm5, %v1166_v48 }
 0x1f4   : > { %1512 = vmatprep.mubr.f32.mxu0 %v2262_v2 }
 0x1f5   : > { %2113 = vmatprep.subr.msk.mxu1 %vm303_vm1, %v1344_v53  ;;  %v1432_v55 = vpop.permute.xlu1 %1431  ;;  %v1698_v61 = vpop.permute.xlu0 %1697 }
 0x1f6   : > { %v1433_v56 = vsel %vm566_vm4, %v1430_v43, %v1432_v55  ;;  %v1434_v57 = vsel %vm566_vm4, %v1432_v55, %v1430_v43  ;;  %2114 = vmatpush1.msk.msra.mxu1 %vm303_vm1, %v1343_v14 }
 0x1f7   : > { %v1435_v27 = vmul.f32 %v1434_v57, %v2453_v31  ;;  %v1436_v28 = vmul.f32 %v1433_v56, %v2468_v39  ;;  %2121 = vmatprep.subr.msk.mxu1 %vm303_vm1, %v1157_v30  ;;  %2115 = vmatmul.mubr.msk.f32.vlgmr.msra.gmra.mxu1 %vm299_vm5, %v2112_v54 }
 0x1f8   : > { %2122 = vmatpush1.msk.msra.mxu1 %vm303_vm1, %v1156_v29  ;;  %1596 = vmatprep.mubr.f32.mxu1 %v2262_v2 }
 0x1f9   : > { %2117 = vmatprep.subr.msk.mxu0 %vm303_vm1, %v1436_v28  ;;  %v1608_v31 = vpop.permute.xlu1 %1607  ;;  %v1790_v8 = vpop.permute.xlu0 %1789 }
 0x1fa   : > { %v1609_v39 = vsel %vm749_vm6, %v1606_v13, %v1608_v31  ;;  %v1610_v63 = vsel %vm749_vm6, %v1608_v31, %v1606_v13  ;;  %2118 = vmatpush1.msk.msra.mxu0 %vm303_vm1, %v1435_v27 }
 0x1fb   : > { %v1611_v3 = vmul.f32 %v1609_v39, %v2478_v44  ;;  %v1612_v4 = vmul.f32 %v1610_v63, %v2493_v51  ;;  %2119 = vmatmul.mubr.msk.f32.vlgmr.msra.gmra.mxu0 %vm299_vm5, %v2116_v59  ;;  %2123 = vmatmul.mubr.msk.f32.vlgmr.msra.gmra.mxu1 %vm299_vm5, %v2120_v60 }
 0x1fc   : > { %1688 = vmatprep.mubr.f32.mxu0 %v2262_v2  ;;  %1780 = vmatprep.mubr.f32.mxu1 %v2262_v2 }
 0x1fd   : > { %2125 = vmatprep.subr.msk.mxu0 %vm303_vm1, %v1612_v4  ;;  %v1700_v6 = vpop.permute.xlu1 %1699  ;;  %v1882_v10 = vpop.permute.xlu0 %1881 }
 0x1fe   : > { %v1701_v44 = vsel %vm850_vm7, %v1698_v61, %v1700_v6  ;;  %v1702_v51 = vsel %vm850_vm7, %v1700_v6, %v1698_v61  ;;  %2126 = vmatpush1.msk.msra.mxu0 %vm303_vm1, %v1611_v3 }
 0x1ff   : > { %v1703_v12 = vmul.f32 %v1701_v44, %v2512_v58  ;;  %v1704_v15 = vmul.f32 %v1702_v51, %v2521_v62  ;;  %2127 = vmatmul.mubr.msk.f32.vlgmr.msra.gmra.mxu0 %vm299_vm5, %v2124_v5 }
 0x200   : > { %1872 = vmatprep.mubr.f32.mxu0 %v2262_v2 }
 0x201   : > { %2129 = vmatprep.subr.msk.mxu1 %vm303_vm1, %v1704_v15  ;;  %v1792_v17 = vpop.permute.xlu1 %1791 }
 0x202   : > { %v1793_v18 = vsel %vm951_vm8, %v1790_v8, %v1792_v17  ;;  %v1794_v19 = vsel %vm951_vm8, %v1792_v17, %v1790_v8  ;;  %2130 = vmatpush1.msk.msra.mxu1 %vm303_vm1, %v1703_v12 }
 0x203   : > { %v1795_v58 = vmul.f32 %v1793_v18, %v2540_v11  ;;  %v1796_v62 = vmul.f32 %v1794_v19, %v2548_v16  ;;  %2131 = vmatmul.mubr.msk.f32.vlgmr.msra.gmra.mxu1 %vm299_vm5, %v2128_v9 }
 0x204   : > { %1964 = vmatprep.mubr.f32.mxu1 %v2262_v2  ;;  %v2136_v2 = vld [vmem:[%s2764_s4 + $0x20] sm:$0xf] }
 0x205   : > { %2133 = vmatprep.subr.msk.mxu0 %vm303_vm1, %v1796_v62  ;;  %v1884_v21 = vpop.permute.xlu1 %1883 }
 0x206   : > { %v1885_v26 = vsel %vm1052_vm9, %v1882_v10, %v1884_v21  ;;  %v1886_v11 = vsel %vm1052_vm9, %v1884_v21, %v1882_v10  ;;  %2134 = vmatpush1.msk.msra.mxu0 %vm303_vm1, %v1795_v58 }
 0x207   : > { %v1887_v16 = vmul.f32 %v2568_v22, %v1885_v26  ;;  %v1888_v29 = vmul.f32 %v2573_v23, %v1886_v11  ;;  %2135 = vmatmul.mubr.msk.f32.vlgmr.msra.gmra.mxu0 %vm299_vm5, %v2132_v20 }
 0x209   : > { %2137 = vmatprep.subr.msk.mxu1 %vm303_vm1, %v1888_v29 }
 0x20a   : > { %2138 = vmatpush1.msk.msra.mxu1 %vm303_vm1, %v1887_v16  ;;  %v1976_v28 = vpop.permute.xlu0 %1975 }
 0x20b   : > { %2139 = vmatmul.mubr.msk.f32.vlgmr.msra.gmra.mxu1 %vm299_vm5, %v2136_v2 }
 0x2af   : > { %v1252_v7 = vpop.f32.mrf.mxu1 }
 0x2b1   : > { %v1254_v30 = vpop.f32.mrf.mxu1 }
 0x2b3   : > { %v1332_v32 = vpop.f32.mrf.mxu0 }
 0x2b4   : > { %v1333_v33 = vadd.f32 %v1332_v32, %v1252_v7 }
 0x2b5   : > { %v1334_v34 = vpop.f32.mrf.mxu0 }
 0x2b6   : > { %v1335_v22 = vadd.f32 %v1334_v34, %v1254_v30 }
 0x2b7   : > { %v1422_v35 = vpop.f32.mrf.mxu1 }
 0x2b8   : > { %v1427_v23 = vadd.f32 %v1422_v35, %v1333_v33 }
 0x2b9   : > { %v1424_v36 = vpop.f32.mrf.mxu1 }
 0x2ba   : > { %v1428_v37 = vadd.f32 %v1424_v36, %v1335_v22 }
 0x2bb   : > { %v1514_v38 = vpop.f32.mrf.mxu0  ;;  %v1598_v40 = vpop.f32.mrf.mxu1 }
 0x2bc   : > { %v1519_v41 = vadd.f32 %v1514_v38, %v1427_v23 }
 0x2bd   : > { %v1516_v42 = vpop.f32.mrf.mxu0  ;;  %v1600_v46 = vpop.f32.mrf.mxu1 }
 0x2be   : > { %v1520_v43 = vadd.f32 %v1516_v42, %v1428_v37  ;;  %v1603_v45 = vadd.f32 %v1598_v40, %v1519_v41 }
 0x2bf   : > { %v1690_v47 = vpop.f32.mrf.mxu0 }
 0x2c0   : > { %v1604_v24 = vadd.f32 %v1600_v46, %v1520_v43  ;;  %v1695_v25 = vadd.f32 %v1690_v47, %v1603_v45 }
 0x2c1   : > { %v1692_v48 = vpop.f32.mrf.mxu0 }
 0x2c2   : > { %v1696_v50 = vadd.f32 %v1692_v48, %v1604_v24 }
 0x2c3   : > { %v1782_v49 = vpop.f32.mrf.mxu1 }
 0x2c4   : > { %v1787_v52 = vadd.f32 %v1782_v49, %v1695_v25 }
 0x2c5   : > { %v1784_v13 = vpop.f32.mrf.mxu1 }
 0x2c6   : > { %v1788_v54 = vadd.f32 %v1784_v13, %v1696_v50 }
 0x2c7   : > { %v1874_v14 = vpop.f32.mrf.mxu0 }
 0x2c8   : > { %v1879_v55 = vadd.f32 %v1874_v14, %v1787_v52 }
 0x2c9   : > { %v1876_v53 = vpop.f32.mrf.mxu0 }
 0x2ca   : > { %v1880_v57 = vadd.f32 %v1876_v53, %v1788_v54 }
 0x2cb   : > { %v1966_v56 = vpop.f32.mrf.mxu1 }
 0x2cc   : > { %v1971_v27 = vadd.f32 %v1966_v56, %v1879_v55 }
 0x2cd   : > { %v1968_v59 = vpop.f32.mrf.mxu1 }
 0x2ce   : > { %v1978_v60 = vadd.f32 %v1976_v28, %v1971_v27  ;;  %v1972_v61 = vadd.f32 %v1968_v59, %v1880_v57 }
 0x2d0   : > { %v1979_v31 = vadd.f32 %v1976_v28, %v1972_v61  ;;  %v1980_v39 = vadd.f32 %v1978_v60, %v2359_v0 }
 0x2d2   : > { %v1981_v63 = vadd.f32 %v1979_v31, %v2367_v1 }
 0x2d4   : > { %v1984_v3 = vcombine.low %v1980_v39, %v1981_v63 }
 0x2d6   : > { %1986 = vst [vmem:[%s244_s26] sm:$0xff] %v1984_v3 }
 0x2d7   : > { %2211 = shalt.err (!%p2208_p3)
}
 0x2d8   : > { %s2212_s14 = scalar_lea.hbm %s2000_s11, 128  ;;  %s2216_s18 = scalar_lea.hbm %s2766_s6, 256 }
 0x2d9   : > { %p2213_p4 = scmp.ne.s32.totalorder %s2000_s11, %s2212_s14  ;;  %p2217_p9 = scmp.lt.s32.totalorder %s2000_s11, %s2766_s6 }
 0x2da   : > { %p2218_p10 = scmp.lt.s32.totalorder %s2216_s18, %s2212_s14 }
 0x2db   : > { %p2214_p7 = pnand %p2213_p4, %p2344_p5 }
 0x2dc   : > { %p2219_p11 = por %p2218_p10, %p2217_p9 }
 0x2dd   : > { %p2215_p8 = pneg %p2214_p7 }
 0x2df   : > { %p2220_p12 = pnand %p2219_p11, %p2215_p8 }
 0x2e1   : > { %2223 = shalt.err (!%p2220_p12)
}
 0x2e2   : > { %2147 = dma.vmem_to_hbm [thread:$0]  (%p2344_p5), %s2003_s29, 128, %s2000_s11, %s1988_s12  }
 0x2e3 PF: > { %p2153_p13 = scmp.ge.s32.totalorder %s2258_s24, 2  ;;  %s2014_s26 = sand.u32 1, %s2246_s21  }
 0x2e4   : > { %s2015_s9 = scalar_lea.sflag [#allocation3], %s2014_s26 }
 0x2e5   : > { %p2150_p0 = pnand %p2153_p13, %p2348_p6 }
 0x2e7   : > { %p2151_p1 = pneg %p2150_p0 }
 0x2e9   : > { %2241 = dma.done.wait (%p2151_p1), %s2015_s9, 128  }
 0x2ea   : > { %2243 = vsyncadd (%p2151_p1), %s2015_s9, 4294967168  ;;  %p16_p2 = scmp.ge.s32.totalorder %s2331_s27, 4   ;;  %s2769_s21 = smov %s2250_s22 }
 0x2eb   : > { %s2770_s22 = smov %s2254_s23  ;;  %s2771_s23 = smov %s2342_s30 }
 0x2ec   : > { %s2772_s24 = smov %s2331_s27  ;;  %18 = sbr.rel (!%p16_p2) target bundleno = 3 (0x3), region = 95 }
 0x2f1   :  { %2020 = vsyncpa [#allocation3], 1 }
 0x2f2   :  { %2022 = vsyncpa [#allocation3 + $0x1], 1 }

</bundles_post_ra>
